<compile_context>
chip_gen: v7x
topology: tpu7x:2x2x1
jax: 0.10.0
libtpu: 0.0.40
codegen_flags: <defaults>
</compile_context>

<pallas_src>
import functools

import jax
import jax.numpy as jnp
from jax.experimental import pallas as pl
from jax.experimental.pallas import tpu as pltpu


_CHUNK_ROWS = 512                     # sublane strip for in-kernel reductions
_MAX_BLOCK_BYTES = 4 * 1024 * 1024    # ~4 MiB per streamed (tn, th) input block
_MAX_ROW_TILE = 1024                  # v7x-safe row-tile cap for the 2-pass path


# ---------------------------------------------------------------------------
# Tile-selection helpers
# ---------------------------------------------------------------------------

def _vmem_limit_bytes():
    """Per-core VMEM capacity (clamped to 128 MiB), used as the scoped limit."""
    cap = 0
    try:
        cap = int(pltpu.get_tpu_info().vmem_capacity_bytes)
    except Exception:
        cap = 0
    if cap <= 0:
        kind = ""
        try:
            kind = jax.devices()[0].device_kind.lower()
        except Exception:
            pass
        # v7x: 64 MiB per TensorCore; v5e / v6e: 128 MiB.
        cap = 64 * 1024 * 1024 if ("v7" in kind or "7x" in kind) else 128 * 1024 * 1024
    return min(cap, 128 * 1024 * 1024)


def _pick_lane_tile(hidden):
    """Lane (channel) tile: multiple of 128 when possible, aiming for >= 4 grid
    steps so BlockSpec double-buffering overlaps DMA with compute and both v7x
    TensorCores are fed; otherwise the full extent (always legal)."""
    if hidden % 128 != 0:
        return hidden
    for cand in (1024, 512, 256, 128):
        if hidden % cand == 0 and hidden // cand >= 4:
            return cand
    for cand in (512, 256, 128):
        if hidden % cand == 0 and hidden // cand >= 2:
            return cand
    return hidden


def _single_pass_lane_tile(hidden, n_rows, budget_bytes, in_bytes, out_bytes, chunk):
    """Largest lane tile whose (n_rows, th) column fits the resident budget.
    Dtype-aware: double-buffered in/out counted at their own width, only the
    small strip temporaries at f32.  Returns None if no tile fits."""
    cands = [_pick_lane_tile(hidden)]
    if hidden % 128 == 0:
        for c in (512, 256, 128):
            if hidden % c == 0 and c < cands[0]:
                cands.append(c)
    for th in cands:
        need = 2 * n_rows * th * (in_bytes + out_bytes) + 4 * chunk * th * 4
        if need <= budget_bytes:
            return th
    return None


def _pick_row_tile(lane_tile, budget_bytes, itemsize, n_rows):
    """Row tile for the streamed two-pass path (dtype-aware, ~4 MiB blocks)."""
    if n_rows < 8:
        return n_rows
    per_row = lane_tile * (4 * itemsize + 8)      # 2x in + 2x out bufs + f32 temps
    tn = max(8, budget_bytes // per_row)
    tn = min(tn, _MAX_BLOCK_BYTES // max(1, lane_tile * itemsize))
    tn = min(tn, _MAX_ROW_TILE)
    tn = max(8, (tn // 8) * 8)
    tn = min(tn, (n_rows // 8) * 8)               # first block is always fully valid
    return tn


# ---------------------------------------------------------------------------
# Kernels
# ---------------------------------------------------------------------------

def _tbn_single_pass_kernel(x_ref, gamma_ref, beta_ref, o_ref, *, eps, chunk):
    """Whole (seq*batch) reduction column resident: stats + normalize fused.

    Processed in sublane strips of `chunk` rows so peak VMEM temporaries are
    O(chunk * th) instead of O(N * th), letting the 2x-traffic path cover much
    larger N (most valuable under v7x's 64 MiB VMEM)."""
    n_rows, n_lanes = x_ref.shape
    n_full = n_rows // chunk
    rem = n_rows - n_full * chunk
    inv_n = 1.0 / n_rows
    zeros = jnp.zeros((1, n_lanes), jnp.float32)

    # Pass A: per-channel mean (f32 accumulation).
    def _sum_body(i, acc):
        r = pl.multiple_of(i * chunk, chunk)
        xs = x_ref[pl.ds(r, chunk), :].astype(jnp.float32)
        return acc + jnp.sum(xs, axis=0, keepdims=True)

    s = jax.lax.fori_loop(0, n_full, _sum_body, zeros)
    if rem:
        s = s + jnp.sum(x_ref[pl.ds(n_full * chunk, rem), :].astype(jnp.float32),
                        axis=0, keepdims=True)
    mean = s * inv_n

    # Pass B: centered (numerically robust) biased variance.
    def _var_body(i, acc):
        r = pl.multiple_of(i * chunk, chunk)
        d = x_ref[pl.ds(r, chunk), :].astype(jnp.float32) - mean
        return acc + jnp.sum(d * d, axis=0, keepdims=True)

    ss = jax.lax.fori_loop(0, n_full, _var_body, zeros)
    if rem:
        d = x_ref[pl.ds(n_full * chunk, rem), :].astype(jnp.float32) - mean
        ss = ss + jnp.sum(d * d, axis=0, keepdims=True)
    var = ss * inv_n

    # Fold the affine into per-channel scale/shift -> 2 VPU ops per element.
    scale = gamma_ref[...].astype(jnp.float32) * jax.lax.rsqrt(var + eps)
    shift = beta_ref[...].astype(jnp.float32) - mean * scale

    # Pass C: y = x * scale + shift, streamed strip by strip (no full-tile temp).
    def _out_body(i, carry):
        r = pl.multiple_of(i * chunk, chunk)
        xs = x_ref[pl.ds(r, chunk), :].astype(jnp.float32)
        o_ref[pl.ds(r, chunk), :] = (xs * scale + shift).astype(o_ref.dtype)
        return carry

    jax.lax.fori_loop(0, n_full, _out_body, 0)
    if rem:
        r = n_full * chunk
        xs = x_ref[pl.ds(r, rem), :].astype(jnp.float32)
        o_ref[pl.ds(r, rem), :] = (xs * scale + shift).astype(o_ref.dtype)


def _tbn_stats_kernel(x_ref, sum_ref, sq_ref, preshift_ref, *,
                      rows_valid, row_tile, need_mask):
    """Pass 1: accumulate per-channel sum / sum-of-squares of (x - preshift).

    preshift = first-tile mean, so the E[x^2]-E[x]^2 reconstruction does not
    cancel catastrophically.  Ragged-row masking is gated to the final tile
    only (interior tiles stay at ~3 VPU ops/element, keeping v7x HBM-bound)."""
    n = pl.program_id(1)
    x = x_ref[...].astype(jnp.float32)

    @pl.when(n == 0)
    def _():
        # First block is always fully valid (row tile <= rows_valid by design).
        preshift_ref[...] = jnp.sum(x, axis=0, keepdims=True) * (1.0 / row_tile)
        sum_ref[...] = jnp.zeros_like(sum_ref)
        sq_ref[...] = jnp.zeros_like(sq_ref)

    shift = preshift_ref[...]

    def _accum(xc):
        sum_ref[...] += jnp.sum(xc, axis=0, keepdims=True)
        sq_ref[...] += jnp.sum(xc * xc, axis=0, keepdims=True)

    if need_mask:
        last = pl.num_programs(1) - 1

        @pl.when(n < last)
        def _():
            _accum(x - shift)

        @pl.when(n == last)
        def _():
            row = jax.lax.broadcasted_iota(jnp.int32, x.shape, 0) + n * row_tile
            _accum(jnp.where(row < rows_valid, x - shift, 0.0))
    else:
        _accum(x - shift)


def _tbn_normalize_kernel(x_ref, scale_ref, shift_ref, o_ref):
    """Pass 2: y = x * scale + shift with pre-folded per-channel scale/shift."""
    o_ref[...] = (x_ref[...].astype(jnp.float32) * scale_ref[...]
                  + shift_ref[...]).astype(o_ref.dtype)


# ---------------------------------------------------------------------------
# Wrapper
# ---------------------------------------------------------------------------

def tbatch_norm(x, gamma, beta, *, eps=1e-5, max_resident_bytes=None):
    """x: (seq_len, batch, hidden); gamma, beta: (hidden,). Training-mode BN."""
    S, B, H = x.shape
    N = S * B
    x2 = x.reshape(N, H)
    g2 = gamma.reshape(1, H).astype(jnp.float32)
    b2 = beta.reshape(1, H).astype(jnp.float32)

    in_b = x.dtype.itemsize
    out_b = in_b

    vmem_limit = _vmem_limit_bytes()
    budget = (vmem_limit * 3) // 4                # size tiles to ~75% of the limit
    resident_budget = budget if max_resident_bytes is None else max_resident_bytes

    def _params(sem):
        return pltpu.CompilerParams(dimension_semantics=sem,
                                    vmem_limit_bytes=vmem_limit)

    # ---- fast path: whole reduction column resident (2x HBM traffic) -------
    chunk = min(_CHUNK_ROWS, max(8, ((N + 7) // 8) * 8))
    th = _single_pass_lane_tile(H, N, resident_budget, in_b, out_b, chunk)
    if th is not None:
        n_h = H // th
        out2 = pl.pallas_call(
            functools.partial(_tbn_single_pass_kernel, eps=eps, chunk=chunk),
            out_shape=jax.ShapeDtypeStruct((N, H), x.dtype),
            grid_spec=pltpu.PrefetchScalarGridSpec(
                num_scalar_prefetch=0,
                grid=(n_h,),
                in_specs=[
                    pl.BlockSpec((N, th), lambda h: (0, h)),
                    pl.BlockSpec((1, th), lambda h: (0, h)),
                    pl.BlockSpec((1, th), lambda h: (0, h)),
                ],
                out_specs=pl.BlockSpec((N, th), lambda h: (0, h)),
            ),
            compiler_params=_params(("parallel",)),
        )(x2, g2, b2)
        return out2.reshape(S, B, H)

    # ---- large-N path: two streamed passes over HBM (3x traffic) -----------
    # NOTE: when H < 256 only one lane tile exists; on v7x the stats pass could
    # additionally split N into two parallel halves to feed both TensorCores.
    th = _pick_lane_tile(H)
    n_h = H // th
    tn = _pick_row_tile(th, budget, in_b, N)      # real VMEM budget, not override
    n_n = pl.cdiv(N, tn)
    need_mask = (N % tn) != 0

    sums, sumsq, preshift = pl.pallas_call(
        functools.partial(_tbn_stats_kernel, rows_valid=N, row_tile=tn,
                          need_mask=need_mask),
        out_shape=(jax.ShapeDtypeStruct((1, H), jnp.float32),
                   jax.ShapeDtypeStruct((1, H), jnp.float32),
                   jax.ShapeDtypeStruct((1, H), jnp.float32)),
        grid_spec=pltpu.PrefetchScalarGridSpec(
            num_scalar_prefetch=0,
            grid=(n_h, n_n),
            in_specs=[pl.BlockSpec((tn, th), lambda h, n: (n, h))],
            out_specs=[pl.BlockSpec((1, th), lambda h, n: (0, h)),
                       pl.BlockSpec((1, th), lambda h, n: (0, h)),
                       pl.BlockSpec((1, th), lambda h, n: (0, h))],
        ),
        compiler_params=_params(("parallel", "arbitrary")),
    )(x2)

    inv_n = 1.0 / N                               # masked rows contribute nothing
    mean_c = sums * inv_n                         # mean of (x - preshift)
    var = jnp.maximum(sumsq * inv_n - jnp.square(mean_c), 0.0)
    mean = preshift + mean_c
    scale = g2 * jax.lax.rsqrt(var + eps)
    shift = b2 - mean * scale

    # Grid (n_h, n_n): scale/shift blocks keep the same index across the inner
    # n sweep (stay resident, no per-step re-fetch); both axes parallel.
    out2 = pl.pallas_call(
        _tbn_normalize_kernel,
        out_shape=jax.ShapeDtypeStruct((N, H), x.dtype),
        grid_spec=pltpu.PrefetchScalarGridSpec(
            num_scalar_prefetch=0,
            grid=(n_h, n_n),
            in_specs=[
                pl.BlockSpec((tn, th), lambda h, n: (n, h)),
                pl.BlockSpec((1, th), lambda h, n: (0, h)),
                pl.BlockSpec((1, th), lambda h, n: (0, h)),
            ],
            out_specs=pl.BlockSpec((tn, th), lambda h, n: (n, h)),
        ),
        compiler_params=_params(("parallel", "parallel")),
    )(x2, scale, shift)

    return out2.reshape(S, B, H)


def tbatch_norm_ref(x, gamma, beta, *, eps=1e-5):
    """Pure-JAX reference mirroring PyTorch training-mode BatchNorm1d."""
    mean = jnp.mean(x, axis=(0, 1), keepdims=True)
    var = jnp.mean(jnp.square(x - mean), axis=(0, 1), keepdims=True)
    return (x - mean) / jnp.sqrt(var + eps) * gamma + beta


if __name__ == "__main__":
    key = jax.random.PRNGKey(0)
    k_x, k_g, k_b, k_x3, k_x4 = jax.random.split(key, 5)

    seq_len, batch, hidden = 8, 2, 32
    x = jax.random.normal(k_x, (seq_len, batch, hidden), dtype=jnp.float32)
    gamma = 0.5 + jax.random.uniform(k_g, (hidden,), dtype=jnp.float32)
    beta = jax.random.normal(k_b, (hidden,), dtype=jnp.float32)

    ref = tbatch_norm_ref(x, gamma, beta)

    # 1) single-pass (resident reduction column) path
    out = jax.block_until_ready(tbatch_norm(x, gamma, beta))
    assert out.shape == (seq_len, batch, hidden)
    assert jnp.allclose(out, ref, atol=1e-5, rtol=1e-5)

    # 2) force the tiled two-pass path (taken for large seq*batch) by shrinking
    #    the resident budget; row/lane tiles still use the real VMEM budget.
    out2 = jax.block_until_ready(
        tbatch_norm(x, gamma, beta, max_resident_bytes=4096))
    assert jnp.allclose(out2, ref, atol=1e-5, rtol=1e-5)

    # 3) ragged-N case (N = 18) exercising the masked last tile of the stats pass.
    x3 = jax.random.normal(k_x3, (9, batch, hidden), dtype=jnp.float32)
    ref3 = tbatch_norm_ref(x3, gamma, beta)
    out3 = jax.block_until_ready(
        tbatch_norm(x3, gamma, beta, max_resident_bytes=4096))
    assert jnp.allclose(out3, ref3, atol=1e-5, rtol=1e-5)

    # 4) bf16 input with H = 256: exercises the lane-split (n_h > 1) single-pass
    #    path and the dtype-aware residency accounting.
    h4 = 256
    g4 = jnp.ones((h4,), dtype=jnp.float32)
    b4 = jnp.zeros((h4,), dtype=jnp.float32)
    x4 = jax.random.normal(k_x4, (seq_len, batch, h4), dtype=jnp.bfloat16)
    ref4 = tbatch_norm_ref(x4.astype(jnp.float32), g4, b4)
    out4 = jax.block_until_ready(tbatch_norm(x4, g4, b4))
    assert out4.dtype == jnp.bfloat16
    assert jnp.allclose(out4.astype(jnp.float32), ref4, atol=5e-2, rtol=5e-2)

    print("KERNEL_OK")
</pallas_src>

<mosaic_0001>
module attributes {stable_mosaic.version = 11 : i64} {
  func.func @_tbn_single_pass_kernel(%arg0: i32, %arg1: memref<16x32xf32, #tpu.memory_space<vmem>>, %arg2: memref<1x32xf32, #tpu.memory_space<vmem>>, %arg3: memref<1x32xf32, #tpu.memory_space<vmem>>, %arg4: memref<16x32xf32, #tpu.memory_space<vmem>>) attributes {dimension_semantics = [#tpu.dimension_semantics<parallel>], iteration_bounds = array<i64: 1>, scalar_prefetch = 0 : i64, scratch_operands = 0 : i64, tpu.core_type = #tpu.core_type<tc>, window_params = [{transform_indices = @transform_0, window_bounds = array<i64: 16, 32>}, {transform_indices = @transform_1, window_bounds = array<i64: 1, 32>}, {transform_indices = @transform_2, window_bounds = array<i64: 1, 32>}, {transform_indices = @transform_3, window_bounds = array<i64: 16, 32>}]} {
    %cst = arith.constant 0.000000e+00 : f32
    %0 = vector.broadcast %cst : f32 to vector<1x32xf32>
    %c0_i32 = arith.constant 0 : i32
    %c16_i32 = arith.constant 16 : i32
    %1 = arith.muli %c0_i32, %c16_i32 : i32
    %2 = tpu.assume_multiple %1, 16 : i32
    %3 = arith.index_cast %2 : i32 to index
    %c0 = arith.constant 0 : index
    %4 = vector.load %arg1[%3, %c0] : memref<16x32xf32, #tpu.memory_space<vmem>>, vector<16x32xf32>
    %cst_0 = arith.constant dense<0.000000e+00> : vector<32xf32>
    %5 = vector.multi_reduction <add>, %4, %cst_0 [0] : vector<16x32xf32> to vector<32xf32>
    %6 = vector.shape_cast %5 : vector<32xf32> to vector<1x32xf32>
    %7 = arith.addf %0, %6 : vector<1x32xf32>
    %c1_i32 = arith.constant 1 : i32
    %cst_1 = arith.constant 6.250000e-02 : f32
    %8 = vector.broadcast %cst_1 : f32 to vector<1x32xf32>
    %9 = arith.mulf %7, %8 : vector<1x32xf32>
    %c0_i32_2 = arith.constant 0 : i32
    %c16_i32_3 = arith.constant 16 : i32
    %10 = arith.muli %c0_i32_2, %c16_i32_3 : i32
    %11 = tpu.assume_multiple %10, 16 : i32
    %12 = arith.index_cast %11 : i32 to index
    %c0_4 = arith.constant 0 : index
    %13 = vector.load %arg1[%12, %c0_4] : memref<16x32xf32, #tpu.memory_space<vmem>>, vector<16x32xf32>
    %14 = vector.broadcast %9 : vector<1x32xf32> to vector<16x32xf32>
    %15 = arith.subf %13, %14 : vector<16x32xf32>
    %16 = arith.mulf %15, %15 : vector<16x32xf32>
    %cst_5 = arith.constant dense<0.000000e+00> : vector<32xf32>
    %17 = vector.multi_reduction <add>, %16, %cst_5 [0] : vector<16x32xf32> to vector<32xf32>
    %18 = vector.shape_cast %17 : vector<32xf32> to vector<1x32xf32>
    %19 = arith.addf %0, %18 : vector<1x32xf32>
    %c1_i32_6 = arith.constant 1 : i32
    %cst_7 = arith.constant 6.250000e-02 : f32
    %20 = vector.broadcast %cst_7 : f32 to vector<1x32xf32>
    %21 = arith.mulf %19, %20 : vector<1x32xf32>
    %c0_8 = arith.constant 0 : index
    %c0_9 = arith.constant 0 : index
    %22 = vector.load %arg2[%c0_8, %c0_9] : memref<1x32xf32, #tpu.memory_space<vmem>>, vector<1x32xf32>
    %cst_10 = arith.constant 9.99999974E-6 : f32
    %23 = vector.broadcast %cst_10 : f32 to vector<1x32xf32>
    %24 = arith.addf %21, %23 : vector<1x32xf32>
    %25 = math.rsqrt %24 : vector<1x32xf32>
    %26 = arith.mulf %22, %25 : vector<1x32xf32>
    %c0_11 = arith.constant 0 : index
    %c0_12 = arith.constant 0 : index
    %27 = vector.load %arg3[%c0_11, %c0_12] : memref<1x32xf32, #tpu.memory_space<vmem>>, vector<1x32xf32>
    %28 = arith.mulf %9, %26 : vector<1x32xf32>
    %29 = arith.subf %27, %28 : vector<1x32xf32>
    %c0_i32_13 = arith.constant 0 : i32
    %c16_i32_14 = arith.constant 16 : i32
    %30 = arith.muli %c0_i32_13, %c16_i32_14 : i32
    %31 = tpu.assume_multiple %30, 16 : i32
    %32 = arith.index_cast %31 : i32 to index
    %c0_15 = arith.constant 0 : index
    %33 = vector.load %arg1[%32, %c0_15] : memref<16x32xf32, #tpu.memory_space<vmem>>, vector<16x32xf32>
    %34 = vector.broadcast %26 : vector<1x32xf32> to vector<16x32xf32>
    %35 = arith.mulf %33, %34 : vector<16x32xf32>
    %36 = vector.broadcast %29 : vector<1x32xf32> to vector<16x32xf32>
    %37 = arith.addf %35, %36 : vector<16x32xf32>
    %38 = arith.index_cast %31 : i32 to index
    %c0_16 = arith.constant 0 : index
    %39 = vector.load %arg4[%38, %c0_16] : memref<16x32xf32, #tpu.memory_space<vmem>>, vector<16x32xf32>
    tpu.vector_store %arg4[%38, %c0_16], %37 {strides = array<i32>} : memref<16x32xf32, #tpu.memory_space<vmem>>, vector<16x32xf32>,
    %c1_i32_17 = arith.constant 1 : i32
    return
  }
  func.func @transform_0(%arg0: i32) -> (i32, i32) {
    %c0_i32 = arith.constant 0 : i32
    %c0_i32_0 = arith.constant 0 : i32
    return %c0_i32, %arg0 : i32, i32
  }
  func.func @transform_1(%arg0: i32) -> (i32, i32) {
    %c0_i32 = arith.constant 0 : i32
    %c0_i32_0 = arith.constant 0 : i32
    return %c0_i32, %arg0 : i32, i32
  }
  func.func @transform_2(%arg0: i32) -> (i32, i32) {
    %c0_i32 = arith.constant 0 : i32
    %c0_i32_0 = arith.constant 0 : i32
    return %c0_i32, %arg0 : i32, i32
  }
  func.func @transform_3(%arg0: i32) -> (i32, i32) {
    %c0_i32 = arith.constant 0 : i32
    %c0_i32_0 = arith.constant 0 : i32
    return %c0_i32, %arg0 : i32, i32
  }
}

</mosaic_0001>

<bundles_post_ra>
// kernel: tpu_custom_call.1
= control target key start
LH: loop header
LB: loop body
LE: loop exit
PB: predicated region body
PF: predicated region fallthrough
CT: control target
= control target key end

     0   :  { %8 = vsyncpa [#allocation3], 0  ;;  %s319_s0 = inlined_call_operand.hbm [shape: f32[16,32], index: 0, kind: input, shape index: {}]   ;;  %s320_s1 = inlined_call_operand.hbm [shape: f32[1,32], index: 1, kind: input, shape index: {}]   ;;  %s321_s2 = inlined_call_operand.hbm [shape: f32[1,32], index: 2, kind: input, shape index: {}]   ;;  %s322_s3 = inlined_call_operand.hbm [shape: f32[16,32], index: 3, kind: output, shape index: {}]  }
   0x1   :  { %9 = vsyncpa [#allocation6], 0 }
   0x2   :  { %10 = vsyncpa [#allocation4], 0  ;;  %s226_s12 = smov [#allocation5]   ;;  %s227_s14 = smov [#allocation2]  }
   0x3   :  { %s29_s13 = sshll.u32 %s226_s12, 4  ;;  %s16_s15 = sshll.u32 %s227_s14, 4  ;;  %s30_s13 = int_to_ptr.vmem [resolvable:$true] %s29_s13  ;;  %s252_s15 = int_to_ptr.vmem [resolvable:$true] %s16_s15 }
   0x4   :  { %s132_s18 = scalar_lea.hbm %s320_s1, 16 }
   0x5   :  { %p133_p0 = scmp.ne.s32.totalorder %s320_s1, %s132_s18  ;;  %p136_p1 = scmp.lt.u32.totalorder %s132_s18, %s320_s1 }
   0x7   :  { %p138_p2 = pnand %p136_p1, %p133_p0 }
   0x9   :  { %141 = shalt.err (!%p138_p2)
}
   0xa   :  { %s142_s23 = scalar_lea.vmem %s30_s13, 16  ;;  %s146_s24 = scalar_lea.vmem %s30_s13, 32 }
   0xb   :  { %p143_p3 = scmp.ne.s32.totalorder %s30_s13, %s142_s23  ;;  %p147_p4 = scmp.lt.s32.totalorder %s30_s13, %s30_s13 }
   0xc   :  { %p148_p5 = scmp.lt.s32.totalorder %s146_s24, %s142_s23 }
   0xe   :  { %p149_p6 = por %p148_p5, %p147_p4 }
  0x10   :  { %p150_p7 = pnand %p149_p6, %p143_p3 }
  0x12   :  { %153 = shalt.err (!%p150_p7)
}
  0x13   :  { %32 = dma.hbm_to_vmem [thread:$0]  %s320_s1, 16, %s30_s13, [#allocation6]  }
  0x14   :  { %s154_s29 = scalar_lea.hbm %s319_s0, 256 }
  0x15   :  { %p155_p8 = scmp.ne.s32.totalorder %s319_s0, %s154_s29  ;;  %p158_p9 = scmp.lt.u32.totalorder %s154_s29, %s319_s0 }
  0x17   :  { %p160_p10 = pnand %p158_p9, %p155_p8 }
  0x19   :  { %163 = shalt.err (!%p160_p10)
}
  0x1a   :  { %s164_s7 = scalar_lea.vmem %s252_s15, 256  ;;  %p169_p12 = scmp.lt.s32.totalorder %s252_s15, %s252_s15 }
  0x1b   :  { %p165_p11 = scmp.ne.s32.totalorder %s252_s15, %s164_s7  ;;  %p170_p13 = scmp.lt.s32.totalorder %s164_s7, %s164_s7 }
  0x1d   :  { %p171_p0 = por %p170_p13, %p169_p12 }
  0x1f   :  { %p172_p1 = pnand %p171_p0, %p165_p11 }
  0x21   :  { %175 = shalt.err (!%p172_p1)
}
  0x22   :  { %s228_s1 = smov 128   ;;  %s229_s8 = smov 8  }
  0x23   :  { %22 = dma.hbm_to_vmem [thread:$0]  %s319_s0, 256, %s252_s15, [#allocation3], %s228_s1, %s228_s1, %s229_s8  }
  0x24   :  { %s230_s11 = smov [#allocation7]   ;;  %s176_s16 = scalar_lea.hbm %s321_s2, 16 }
  0x25   :  { %s39_s12 = sshll.u32 %s230_s11, 4  ;;  %p177_p2 = scmp.ne.s32.totalorder %s321_s2, %s176_s16  ;;  %s40_s12 = int_to_ptr.vmem [resolvable:$true] %s39_s12 }
  0x26   :  { %p180_p3 = scmp.lt.u32.totalorder %s176_s16, %s321_s2 }
  0x28   :  { %p182_p4 = pnand %p180_p3, %p177_p2 }
  0x2a   :  { %185 = shalt.err (!%p182_p4)
}
  0x2b   :  { %s186_s21 = scalar_lea.vmem %s40_s12, 16  ;;  %s190_s0 = scalar_lea.vmem %s40_s12, 32 }
  0x2c   :  { %p187_p5 = scmp.ne.s32.totalorder %s40_s12, %s186_s21  ;;  %p191_p6 = scmp.lt.s32.totalorder %s40_s12, %s40_s12 }
  0x2d   :  { %p192_p7 = scmp.lt.s32.totalorder %s190_s0, %s186_s21 }
  0x2f   :  { %p193_p8 = por %p192_p7, %p191_p6 }
  0x31   :  { %p194_p9 = pnand %p193_p8, %p187_p5 }
  0x33   :  { %197 = shalt.err (!%p194_p9)
}
  0x34   :  { %42 = dma.hbm_to_vmem [thread:$0]  %s321_s2, 16, %s40_s12, [#allocation6]  }
  0x35   :  { %220 = dma.done.wait [#allocation3], 256  }
  0x36   :  { %221 = vsyncadd [#allocation3], 4294967040 }
  0x37   :  { %222 = dma.done.wait [#allocation6], 32  }
  0x38   :  { %223 = vsyncadd [#allocation6], 4294967264  ;;  %vm54_vm0 = vcmask 261120   ;;  %v52_v0 = vld [vmem:[#allocation2] sm:$0xff]  ;;  %v53_v1 = vld [vmem:[#allocation2 + $0x8] sm:$0xff]  ;;  %v89_v27 = vlaneseq  ;;  %s231_s2 = smov [#allocation8]  }
  0x39   :  { %v55_v2 = vsel %vm54_vm0, %v52_v0, 0.0  ;;  %v56_v3 = vsel %vm54_vm0, %v53_v1, 0.0  ;;  %v81_v29 = vld [vmem:[#allocation5] sm:$0x1]  ;;  %v85_v33 = vld [vmem:[#allocation7] sm:$0x1] }
  0x3a   :  { %v57_v4 = vadd.f32 %v56_v3, %v55_v2  ;;  %v90_v28 = vshrl.u32 %v89_v27, 7  ;;  %s111_s23 = sshll.u32 %s231_s2, 4  ;;  %s112_s23 = int_to_ptr.vmem [resolvable:$true] %s111_s23 }
  0x3b   :  { %s198_s24 = scalar_lea.vmem %s112_s23, 256  ;;  %p203_p11 = scmp.lt.s32.totalorder %s112_s23, %s112_s23 }
  0x3c   :  { %v58_v5 = vrot.slane %v57_v4, 4  ;;  %v91_v30 = vsub.s32 0, %v90_v28  ;;  %p199_p10 = scmp.ne.s32.totalorder %s112_s23, %s198_s24  ;;  %p204_p12 = scmp.lt.s32.totalorder %s198_s24, %s198_s24 }
  0x3e   :  { %v59_v6 = vadd.f32 %v58_v5, %v57_v4  ;;  %p205_p13 = por %p204_p12, %p203_p11 }
  0x40   :  { %v60_v7 = vrot.slane %v59_v6, 2  ;;  %p206_p0 = pnand %p205_p13, %p199_p10 }
  0x42   :  { %v61_v8 = vadd.f32 %v60_v7, %v59_v6 }
  0x44   :  { %v62_v9 = vrot.slane %v61_v8, 1 }
  0x46   :  { %v63_v10 = vadd.f32 %v62_v9, %v61_v8 }
  0x48   :  { %v65_v11 = vmul.f32 0.0625, %v63_v10 }
  0x4a   :  { %v66_v12 = vsub.f32 %v52_v0, %v65_v11  ;;  %v67_v13 = vsub.f32 %v53_v1, %v65_v11 }
  0x4c   :  { %v68_v14 = vmul.f32 %v66_v12, %v66_v12  ;;  %v69_v15 = vmul.f32 %v67_v13, %v67_v13 }
  0x4e   :  { %v70_v16 = vsel %vm54_vm0, %v68_v14, 0.0  ;;  %v71_v17 = vsel %vm54_vm0, %v69_v15, 0.0 }
  0x4f   :  { %v72_v18 = vadd.f32 %v71_v17, %v70_v16 }
  0x51   :  { %v73_v19 = vrot.slane %v72_v18, 4 }
  0x53   :  { %v74_v20 = vadd.f32 %v73_v19, %v72_v18 }
  0x55   :  { %v75_v21 = vrot.slane %v74_v20, 2 }
  0x57   :  { %v76_v22 = vadd.f32 %v75_v21, %v74_v20 }
  0x59   :  { %v77_v23 = vrot.slane %v76_v22, 1 }
  0x5b   :  { %v78_v24 = vadd.f32 %v77_v23, %v76_v22 }
  0x5d   :  { %v80_v25 = vmul.f32 0.0625, %v78_v24 }
  0x5f   :  { %v82_v26 = vadd.f32 1e-05, %v80_v25 }
  0x61   :  { %130 = vrsqrt.f32 %v82_v26 }
  0x6b   :  { %v131_v31 = vpop.eup %130 }
  0x6c   :  { %v84_v32 = vmul.f32 %v131_v31, %v81_v29 }
  0x6e   :  { %v86_v34 = vmul.f32 %v84_v32, %v65_v11  ;;  %v92_v35 = vrot.slane %v84_v32, %v91_v30 }
  0x70   :  { %v87_v36 = vsub.f32 %v85_v33, %v86_v34  ;;  %v94_v37 = vmul.f32 %v92_v35, %v52_v0  ;;  %v95_v38 = vmul.f32 %v92_v35, %v53_v1 }
  0x72   :  { %v100_v39 = vrot.slane %v87_v36, %v91_v30 }
  0x74   :  { %v102_v40 = vadd.f32 %v100_v39, %v94_v37  ;;  %v103_v41 = vadd.f32 %v100_v39, %v95_v38 }
  0x76   :  { %104 = vst.msk [vmem:[#allocation8] sm:$0xff] %vm54_vm0, %v102_v40  ;;  %105 = vst.msk [vmem:[#allocation8 + $0x8] sm:$0xff] %vm54_vm0, %v103_v41 }
  0x77   :  { %209 = shalt.err (!%p206_p0)
}
  0x78   :  { %s210_s27 = scalar_lea.hbm %s322_s3, 256 }
  0x79   :  { %p211_p1 = scmp.ne.s32.totalorder %s322_s3, %s210_s27  ;;  %p214_p2 = scmp.lt.u32.totalorder %s210_s27, %s322_s3 }
  0x7b   :  { %p216_p3 = pnand %p214_p2, %p211_p1 }
  0x7d   :  { %219 = shalt.err (!%p216_p3)
}
  0x7e   :  { %117 = dma.vmem_to_hbm [thread:$0]  %s112_s23, 256, %s322_s3, [#allocation4], %s228_s1, %s228_s1, %s229_s8  }
  0x7f   :  { %224 = dma.done.wait [#allocation4], 256  }
  0x80   :  { %225 = vsyncadd [#allocation4], 4294967040 }
  0x81   :  { %121 = vsyncpa [#allocation3], 1 }
  0x82   :  { %122 = vsyncpa [#allocation6], 1 }
  0x83   :  { %123 = vsyncpa [#allocation4], 1 }

</bundles_post_ra>
